<compile_context>
chip_gen: v6e
topology: v6e:2x2x1
jax: 0.10.0
libtpu: 0.0.40
codegen_flags: <defaults>
</compile_context>

<pallas_src>
import jax
import jax.numpy as jnp
from jax import lax
from jax.experimental import pallas as pl
from jax.experimental.pallas import tpu as pltpu

KH = KW = 3  # 3x3 convs, stride 1, padding 1


def _encoder_head_kernel(p_ref, w1_ref, b1_ref, w2_ref, b2_ref, out_ref):
    """Fused (conv1+bias+ReLU) -> (conv2+bias+ReLU) restricted to the
    receptive field of output pixel (0, 0).

    p_ref  : (B, 4*9*Cin)     packed im2col patches (4 h1 positions per row)
    w1_ref : (4*9*Cin, 4*C1)  block-diagonal conv1 weight
    b1_ref : (1, 4*C1)        conv1 bias tiled over the 4 positions
    w2_ref : (4*C1, C2)       conv2 taps (1+dh, 1+dw), stacked over positions
    b2_ref : (1, C2)
    out_ref: (B, C2)          == encoder(x)[:, :, 0, 0]
    """
    h1 = jnp.dot(p_ref[...], w1_ref[...], preferred_element_type=jnp.float32)
    h1 = jnp.maximum(h1 + b1_ref[...], 0.0)                      # (B, 4*C1)
    out = jnp.dot(h1, w2_ref[...], preferred_element_type=jnp.float32)
    out = jnp.maximum(out + b2_ref[...], 0.0)                    # (B, C2)
    out_ref[...] = out.astype(out_ref.dtype)


def encoder_forward(x_nchw, params):
    """Pallas implementation of Encoder.forward.  Input is NCHW (PyTorch)."""
    w1, b1, w2, b2 = params                     # conv weights in HWIO layout
    B, Cin, H, W = x_nchw.shape
    C1, C2 = w1.shape[-1], w2.shape[-1]
    K1 = KH * KW * Cin                          # 36

    # ---- wrapper-side layout plumbing (no FLOPs) -------------------------
    # Receptive field of conv2 output (0,0): h1[0:2, 0:2] <- x_pad[0:4, 0:4].
    x_nhwc = jnp.transpose(x_nchw, (0, 2, 3, 1))                  # NCHW->NHWC
    xpad = jnp.pad(x_nhwc, ((0, 0), (1, 1), (1, 1), (0, 0)))[:, :4, :4, :]

    # im2col patches for the 4 needed h1 positions, packed along one row per
    # batch element; position order (dh, dw) = (0,0), (0,1), (1,0), (1,1).
    patches = jnp.concatenate(
        [xpad[:, dh:dh + KH, dw:dw + KW, :].reshape(B, K1)
         for dh in range(2) for dw in range(2)],
        axis=1)                                                   # (B, 4*K1)

    # Block-diagonal conv1 weight: one K=4*K1 matmul yields all 4 positions.
    w1p = w1.reshape(K1, C1)
    w1bd = jnp.zeros((4 * K1, 4 * C1), jnp.float32)
    for p in range(4):
        w1bd = w1bd.at[p * K1:(p + 1) * K1, p * C1:(p + 1) * C1].set(w1p)
    b1t = jnp.tile(b1, 4).reshape(1, 4 * C1)

    # conv2: with zero padding, only taps (kh,kw) in {1,2}x{1,2} touch the
    # valid 2x2 h1 block when producing output pixel (0,0).
    w2p = jnp.concatenate(
        [w2[1 + dh, 1 + dw] for dh in range(2) for dw in range(2)],
        axis=0)                                                   # (4*C1, C2)
    b2r = b2.reshape(1, C2)

    # ---- single-block Pallas call (reduced problem fits in a few vregs) ---
    # TODO(synk): for a scaled-up encoder (large B), tile the grid over B
    # ("parallel") and budget double-buffered blocks against v7x's 64 MiB VMEM.
    out = pl.pallas_call(
        _encoder_head_kernel,
        out_shape=jax.ShapeDtypeStruct((B, C2), jnp.float32),
        grid=(1,),
        in_specs=[
            pl.BlockSpec((B, 4 * K1), lambda i: (0, 0)),
            pl.BlockSpec((4 * K1, 4 * C1), lambda i: (0, 0)),
            pl.BlockSpec((1, 4 * C1), lambda i: (0, 0)),
            pl.BlockSpec((4 * C1, C2), lambda i: (0, 0)),
            pl.BlockSpec((1, C2), lambda i: (0, 0)),
        ],
        out_specs=pl.BlockSpec((B, C2), lambda i: (0, 0)),
        compiler_params=pltpu.CompilerParams(
            dimension_semantics=("arbitrary",)),
    )(patches, w1bd, b1t, w2p, b2r)
    return out                                  # == encoder(x)[:, :, 0, 0]


def encoder_reference(x_nchw, params):
    """Pure-JAX reference (full lax.conv encoder, then slice) for validation."""
    w1, b1, w2, b2 = params
    w1_oihw = jnp.transpose(w1, (3, 2, 0, 1))
    w2_oihw = jnp.transpose(w2, (3, 2, 0, 1))
    dn = ("NCHW", "OIHW", "NCHW")
    y = lax.conv_general_dilated(x_nchw, w1_oihw, (1, 1),
                                 ((1, 1), (1, 1)), dimension_numbers=dn)
    y = jnp.maximum(y + b1[None, :, None, None], 0.0)
    y = lax.conv_general_dilated(y, w2_oihw, (1, 1),
                                 ((1, 1), (1, 1)), dimension_numbers=dn)
    y = jnp.maximum(y + b2[None, :, None, None], 0.0)
    return y[:, :, 0, 0]


def init_params(key, c_in=4, c1=8, c2=16):
    k1, k2, k3, k4 = jax.random.split(key, 4)
    w1 = jax.random.normal(k1, (KH, KW, c_in, c1), jnp.float32) * 0.1
    b1 = jax.random.normal(k2, (c1,), jnp.float32) * 0.1
    w2 = jax.random.normal(k3, (KH, KW, c1, c2), jnp.float32) * 0.1
    b2 = jax.random.normal(k4, (c2,), jnp.float32) * 0.1
    return w1, b1, w2, b2


if __name__ == "__main__":
    key = jax.random.PRNGKey(0)
    k_x, k_p = jax.random.split(key)

    B, C, H, W = 2, 4, 16, 16                  # PyTorch NCHW input shape
    x = jax.random.normal(k_x, (B, C, H, W), jnp.float32)
    params = init_params(k_p, c_in=C, c1=8, c2=16)

    out = jax.block_until_ready(encoder_forward(x, params))
    ref = jax.block_until_ready(encoder_reference(x, params))

    assert out.shape == (B, 16), out.shape
    assert jnp.allclose(out, ref, atol=1e-4, rtol=1e-4), \
        f"max err {jnp.max(jnp.abs(out - ref))}"
    print("KERNEL_OK")
</pallas_src>

<mosaic_0001>
module attributes {stable_mosaic.version = 11 : i64} {
  func.func @_encoder_head_kernel(%arg0: i32, %arg1: memref<2x144xf32, #tpu.memory_space<vmem>>, %arg2: memref<144x32xf32, #tpu.memory_space<vmem>>, %arg3: memref<1x32xf32, #tpu.memory_space<vmem>>, %arg4: memref<32x16xf32, #tpu.memory_space<vmem>>, %arg5: memref<1x16xf32, #tpu.memory_space<vmem>>, %arg6: memref<2x16xf32, #tpu.memory_space<vmem>>) attributes {dimension_semantics = [#tpu.dimension_semantics<arbitrary>], iteration_bounds = array<i64: 1>, scalar_prefetch = 0 : i64, scratch_operands = 0 : i64, tpu.core_type = #tpu.core_type<tc>, window_params = [{pipeline_mode = #tpu.pipeline_mode<synchronous>, transform_indices = @transform_0, window_bounds = array<i64: 2, 144>}, {pipeline_mode = #tpu.pipeline_mode<synchronous>, transform_indices = @transform_1, window_bounds = array<i64: 144, 32>}, {pipeline_mode = #tpu.pipeline_mode<synchronous>, transform_indices = @transform_2, window_bounds = array<i64: 1, 32>}, {pipeline_mode = #tpu.pipeline_mode<synchronous>, transform_indices = @transform_3, window_bounds = array<i64: 32, 16>}, {pipeline_mode = #tpu.pipeline_mode<synchronous>, transform_indices = @transform_4, window_bounds = array<i64: 1, 16>}, {pipeline_mode = #tpu.pipeline_mode<synchronous>, transform_indices = @transform_5, window_bounds = array<i64: 2, 16>}]} {
    %c0 = arith.constant 0 : index
    %c0_0 = arith.constant 0 : index
    %0 = vector.load %arg1[%c0, %c0_0] : memref<2x144xf32, #tpu.memory_space<vmem>>, vector<2x144xf32>
    %c0_1 = arith.constant 0 : index
    %c0_2 = arith.constant 0 : index
    %1 = vector.load %arg2[%c0_1, %c0_2] : memref<144x32xf32, #tpu.memory_space<vmem>>, vector<144x32xf32>
    %cst = arith.constant dense<0.000000e+00> : vector<2x32xf32>
    %2 = tpu.matmul %0, %1, %cst {dimension_numbers = #tpu.dot_dimension_numbers<[1], [0], [0], [1], [0, 0, 1, 1], [], []>} : vector<2x144xf32>, vector<144x32xf32>, vector<2x32xf32> -> vector<2x32xf32>
    %c0_3 = arith.constant 0 : index
    %c0_4 = arith.constant 0 : index
    %3 = vector.load %arg3[%c0_3, %c0_4] : memref<1x32xf32, #tpu.memory_space<vmem>>, vector<1x32xf32>
    %4 = vector.broadcast %3 : vector<1x32xf32> to vector<2x32xf32>
    %5 = arith.addf %2, %4 : vector<2x32xf32>
    %cst_5 = arith.constant 0.000000e+00 : f32
    %6 = vector.broadcast %cst_5 : f32 to vector<2x32xf32>
    %7 = arith.maximumf %5, %6 : vector<2x32xf32>
    %c0_6 = arith.constant 0 : index
    %c0_7 = arith.constant 0 : index
    %8 = vector.load %arg4[%c0_6, %c0_7] : memref<32x16xf32, #tpu.memory_space<vmem>>, vector<32x16xf32>
    %cst_8 = arith.constant dense<0.000000e+00> : vector<2x16xf32>
    %9 = tpu.matmul %7, %8, %cst_8 {dimension_numbers = #tpu.dot_dimension_numbers<[1], [0], [0], [1], [0, 0, 1, 1], [], []>} : vector<2x32xf32>, vector<32x16xf32>, vector<2x16xf32> -> vector<2x16xf32>
    %c0_9 = arith.constant 0 : index
    %c0_10 = arith.constant 0 : index
    %10 = vector.load %arg5[%c0_9, %c0_10] : memref<1x16xf32, #tpu.memory_space<vmem>>, vector<1x16xf32>
    %11 = vector.broadcast %10 : vector<1x16xf32> to vector<2x16xf32>
    %12 = arith.addf %9, %11 : vector<2x16xf32>
    %cst_11 = arith.constant 0.000000e+00 : f32
    %13 = vector.broadcast %cst_11 : f32 to vector<2x16xf32>
    %14 = arith.maximumf %12, %13 : vector<2x16xf32>
    %c0_12 = arith.constant 0 : index
    %c0_13 = arith.constant 0 : index
    %15 = vector.load %arg6[%c0_12, %c0_13] : memref<2x16xf32, #tpu.memory_space<vmem>>, vector<2x16xf32>
    tpu.vector_store %arg6[%c0_12, %c0_13], %14 {strides = array<i32>} : memref<2x16xf32, #tpu.memory_space<vmem>>, vector<2x16xf32>,
    return
  }
  func.func @transform_0(%arg0: i32) -> (i32, i32) {
    %c0_i32 = arith.constant 0 : i32
    %c0_i32_0 = arith.constant 0 : i32
    %c0_i32_1 = arith.constant 0 : i32
    return %c0_i32, %c0_i32_0 : i32, i32
  }
  func.func @transform_1(%arg0: i32) -> (i32, i32) {
    %c0_i32 = arith.constant 0 : i32
    %c0_i32_0 = arith.constant 0 : i32
    %c0_i32_1 = arith.constant 0 : i32
    return %c0_i32, %c0_i32_0 : i32, i32
  }
  func.func @transform_2(%arg0: i32) -> (i32, i32) {
    %c0_i32 = arith.constant 0 : i32
    %c0_i32_0 = arith.constant 0 : i32
    %c0_i32_1 = arith.constant 0 : i32
    return %c0_i32, %c0_i32_0 : i32, i32
  }
  func.func @transform_3(%arg0: i32) -> (i32, i32) {
    %c0_i32 = arith.constant 0 : i32
    %c0_i32_0 = arith.constant 0 : i32
    %c0_i32_1 = arith.constant 0 : i32
    return %c0_i32, %c0_i32_0 : i32, i32
  }
  func.func @transform_4(%arg0: i32) -> (i32, i32) {
    %c0_i32 = arith.constant 0 : i32
    %c0_i32_0 = arith.constant 0 : i32
    %c0_i32_1 = arith.constant 0 : i32
    return %c0_i32, %c0_i32_0 : i32, i32
  }
  func.func @transform_5(%arg0: i32) -> (i32, i32) {
    %c0_i32 = arith.constant 0 : i32
    %c0_i32_0 = arith.constant 0 : i32
    %c0_i32_1 = arith.constant 0 : i32
    return %c0_i32, %c0_i32_0 : i32, i32
  }
}

</mosaic_0001>

<bundles_post_ra>
// kernel: tpu_custom_call.1
= control target key start
LH: loop header
LB: loop body
LE: loop exit
PB: predicated region body
PF: predicated region fallthrough
CT: control target
= control target key end

     0   :  { %v279_v1 = vmov 0.0   ;;  %vm57_vm0 = vcmask 130048   ;;  %s413_s0 = inlined_call_operand.vmem [shape: f32[2,144], index: 0, kind: input, shape index: {}]   ;;  %s414_s1 = inlined_call_operand.vmem [shape: f32[144,32], index: 1, kind: input, shape index: {}]   ;;  %s415_s2 = inlined_call_operand.vmem [shape: f32[1,32], index: 2, kind: input, shape index: {}]   ;;  %s416_s3 = inlined_call_operand.vmem [shape: f32[32,16], index: 3, kind: input, shape index: {}]   ;;  %s417_s4 = inlined_call_operand.vmem [shape: f32[1,16], index: 4, kind: input, shape index: {}]   ;;  %s418_s5 = inlined_call_operand.hbm [shape: f32[2,16], index: 5, kind: output, shape index: {}]  }
   0x1   :  { %v37_v0 = vld [vmem:[%s414_s1 + $0x78] sm:$0xff]  ;;  %60 = vmatprep.subr.mxu0 %v279_v1  ;;  %v36_v2 = vld [vmem:[%s414_s1 + $0x70] sm:$0xff]  ;;  %243 = vmatprep.subr.mxu1 %v279_v1  ;;  %v35_v3 = vld [vmem:[%s414_s1 + $0x68] sm:$0xff] }
   0x2   :  { %61 = vmatpush1.msra.mxu0 %v37_v0  ;;  %v34_v4 = vld [vmem:[%s414_s1 + $0x60] sm:$0xff]  ;;  %v134_v6 = vld [vmem:[%s416_s3 + $0x18] sm:$0xff] }
   0x3   :  { %62 = vmatprep.subr.mxu0 %v279_v1  ;;  %v234_v5 = vld.sshfl [vmem:[%s413_s0] sm:$0x33 pattern:$0x76325410]  ;;  %v33_v7 = vld [vmem:[%s414_s1 + $0x58] sm:$0xff]  ;;  %244 = vmatpush3.msra.mxu1 %v134_v6 }
   0x4   :  { %63 = vmatpush1.msra.mxu0 %v36_v2  ;;  %v55_v8 = vcombine.high %v234_v5, %v234_v5 }
   0x5   :  { %64 = vmatprep.subr.mxu0 %v279_v1 }
   0x6   :  { %65 = vmatpush1.msra.mxu0 %v35_v3 }
   0x7   :  { %66 = vmatprep.subr.mxu0 %v279_v1 }
   0x8   :  { %10 = vsyncpa [#allocation3], 0  ;;  %67 = vmatpush1.msra.mxu0 %v34_v4  ;;  %245 = vmatprep.subr.mxu1 %v279_v1  ;;  %v32_v9 = vld [vmem:[%s414_s1 + $0x50] sm:$0xff]  ;;  %v31_v10 = vld [vmem:[%s414_s1 + $0x48] sm:$0xff]  ;;  %vm280_vm1 = vmmov 0   ;;  %vm142_vm2 = vcmask 261120  }
   0x9   :  { %68 = vmatprep.subr.mxu0 %v279_v1  ;;  %235 = vmatprep.mubr.msk.f32.mxu0 %vm57_vm0, %v55_v8  ;;  %v30_v11 = vld [vmem:[%s414_s1 + $0x40] sm:$0xff]  ;;  %v29_v12 = vld [vmem:[%s414_s1 + $0x38] sm:$0xff]  ;;  %v28_v13 = vld [vmem:[%s414_s1 + $0x30] sm:$0xff]  ;;  %vm217_vm3 = vcmask 123904  }
   0xa   :  { %69 = vmatpush1.msra.mxu0 %v33_v7  ;;  %v27_v14 = vld [vmem:[%s414_s1 + $0x28] sm:$0xff]  ;;  %v26_v15 = vld [vmem:[%s414_s1 + $0x20] sm:$0xff]  ;;  %v25_v16 = vld [vmem:[%s414_s1 + $0x18] sm:$0xff]  ;;  %251 = vmatprep.mubr.msk.f32.mxu1 %vm280_vm1, %v279_v1 }
   0xb   :  { %70 = vmatprep.subr.mxu0 %v279_v1  ;;  %v24_v17 = vld [vmem:[%s414_s1 + $0x10] sm:$0xff]  ;;  %v23_v18 = vld [vmem:[%s414_s1 + $0x8] sm:$0xff]  ;;  %v22_v19 = vld [vmem:[%s414_s1] sm:$0xff] }
   0xc   :  { %71 = vmatpush1.msra.mxu0 %v32_v9  ;;  %v39_v20 = vld [vmem:[%s414_s1 + $0x88] sm:$0xff]  ;;  %v38_v21 = vld [vmem:[%s414_s1 + $0x80] sm:$0xff]  ;;  %v133_v22 = vld [vmem:[%s416_s3 + $0x10] sm:$0xff] }
   0xd   :  { %72 = vmatprep.subr.mxu0 %v279_v1  ;;  %246 = vmatpush3.msra.mxu1 %v133_v22  ;;  %v132_v23 = vld [vmem:[%s416_s3 + $0x8] sm:$0xff]  ;;  %v131_v24 = vld [vmem:[%s416_s3] sm:$0xff]  ;;  %s281_s3 = smov [#allocation2]  }
   0xe   :  { %73 = vmatpush1.msra.mxu0 %v31_v10  ;;  %247 = vmatprep.subr.mxu1 %v279_v1  ;;  %v233_v25 = vld [vmem:[%s415_s2] ss:$0 sm:$0xff]  ;;  %s225_s15 = sshll.u32 %s281_s3, 4  ;;  %s226_s15 = int_to_ptr.vmem [resolvable:$true] %s225_s15 }
   0xf   :  { %74 = vmatprep.subr.mxu0 %v279_v1  ;;  %248 = vmatpush3.msra.mxu1 %v132_v23  ;;  %v236_v30 = vld [vmem:[%s417_s4] ss:$0 sm:$0xff]  ;;  %s257_s2 = scalar_lea.vmem %s226_s15, 32  ;;  %p262_p1 = scmp.lt.s32.totalorder %s226_s15, %s226_s15 }
  0x10   :  { %75 = vmatpush1.msra.mxu0 %v30_v11  ;;  %249 = vmatprep.subr.mxu1 %v279_v1  ;;  %p258_p0 = scmp.ne.s32.totalorder %s226_s15, %s257_s2  ;;  %p263_p2 = scmp.lt.s32.totalorder %s257_s2, %s257_s2 }
  0x11   :  { %76 = vmatprep.subr.mxu0 %v279_v1  ;;  %250 = vmatpush3.msra.mxu1 %v131_v24 }
  0x12   :  { %77 = vmatpush1.msra.mxu0 %v29_v12  ;;  %p264_p3 = por %p263_p2, %p262_p1 }
  0x13   :  { %78 = vmatprep.subr.mxu0 %v279_v1 }
  0x14   :  { %79 = vmatpush1.msra.mxu0 %v28_v13  ;;  %p265_p4 = pnand %p264_p3, %p258_p0 }
  0x15   :  { %80 = vmatprep.subr.mxu0 %v279_v1 }
  0x16   :  { %81 = vmatpush1.msra.mxu0 %v27_v14 }
  0x17   :  { %82 = vmatprep.subr.mxu0 %v279_v1 }
  0x18   :  { %83 = vmatpush1.msra.mxu0 %v26_v15 }
  0x19   :  { %84 = vmatprep.subr.mxu0 %v279_v1 }
  0x1a   :  { %85 = vmatpush1.msra.mxu0 %v25_v16 }
  0x1b   :  { %86 = vmatprep.subr.mxu0 %v279_v1 }
  0x1c   :  { %87 = vmatpush1.msra.mxu0 %v24_v17 }
  0x1d   :  { %88 = vmatprep.subr.mxu0 %v279_v1 }
  0x1e   :  { %89 = vmatpush1.msra.mxu0 %v23_v18 }
  0x1f   :  { %90 = vmatprep.subr.mxu0 %v279_v1 }
  0x20   :  { %91 = vmatpush1.msra.mxu0 %v22_v19 }
  0x21   :  { %120 = vmatprep.subr.mxu0 %v279_v1 }
  0x22   :  { %121 = vmatpush2.msra.mxu0 %v39_v20 }
  0x23   :  { %122 = vmatprep.subr.mxu0 %v279_v1 }
  0x24   :  { %123 = vmatpush2.msra.mxu0 %v38_v21 }
  0x25   :  { %125 = vmatmul.mubr.f32.vlgmr.msra.gmra.mxu0 %v234_v5 }
  0xe5   :  { %v126_v26 = vpop.f32.mrf.mxu0 }
  0xe6   :  { %v127_v27 = vadd.f32 %v233_v25, %v126_v26 }
  0xe7   :  { %v128_v28 = vpop.f32.mrf.mxu0 }
  0xe8   :  { %v130_v29 = vmax.f32 %v127_v27, 0.0 }
  0xea   :  { %252 = vmatmul.mubr.msk.f32.vlgmr.msra.gmra.mxu1 %vm142_vm2, %v130_v29 }
 0x1aa   :  { %v212_v31 = vpop.f32.mrf.mxu1 }
 0x1ab   :  { %v213_v32 = vadd.f32 %v236_v30, %v212_v31 }
 0x1ac   :  { %v253_v33 = vpop.f32.mrf.mxu1 }
 0x1ad   :  { %v216_v34 = vmax.f32 %v213_v32, 0.0 }
 0x1af   :  { %218 = vst.msk [vmem:[#allocation2] sm:$0x3] %vm217_vm3, %v216_v34 }
 0x1b0   :  { %268 = shalt.err (!%p265_p4)
}
 0x1b1   :  { %228 = dma.vmem_to_hbm [thread:$0]  %s226_s15, 32, %s418_s5, [#allocation3]  }
 0x1b2   :  { %277 = dma.done.wait [#allocation3], 32  }
 0x1b3   :  { %278 = vsyncadd [#allocation3], 4294967264 }
 0x1b4   :  { %232 = vsyncpa [#allocation3], 1 }

</bundles_post_ra>
